<compile_context>
chip_gen: v6e
topology: v6e:2x2x1
jax: 0.10.0
libtpu: 0.0.40
codegen_flags: <defaults>
</compile_context>

<pallas_src>
import functools
import math

import jax
import jax.numpy as jnp
from jax.experimental import pallas as pl
from jax.experimental.pallas import tpu as pltpu


def _attention_stack_kernel(x_ref, w_ref, b_ref, o_ref, *,
                            num_heads: int, head_dim: int, seq_len: int):
    """One SelfAttention layer on one (Bb*S, H) activation slab.

    Grid = (batch_blocks, num_layers); the layer axis is innermost and
    "arbitrary", and the activation is carried across it in the resident
    output block `o_ref`.

    x_ref : (Bb*S, H)      VMEM  original input slab (used only at layer 0)
    w_ref : (1, 3, H, H)   VMEM  this layer's [Wq*scale, Wk, Wv] (y = x @ W)
    b_ref : (1, 3, 1, H)   VMEM  this layer's [bq*scale, bk, bv], f32
    o_ref : (Bb*S, H)      VMEM  activation carry / final output
    """
    rows, H = x_ref.shape
    bb = rows // seq_len
    l = pl.program_id(1)

    # Layer 0: seed the activation carry from the input slab.
    @pl.when(l == 0)
    def _():
        o_ref[...] = x_ref[...]

    x = o_ref[...]                       # previous layer's activation
    cdt = x.dtype                        # compute dtype for MXU operands

    def proj(j):
        # Lane-dense (rows, H) projection; f32 accumulation, bias already f32.
        y = jnp.dot(x, w_ref[0, j, :, :], preferred_element_type=jnp.float32)
        y = y + b_ref[0, j, :, :]
        return y.astype(cdt).reshape(bb, seq_len, H)

    q = proj(0)   # already scaled by 1/sqrt(head_dim) via folded Wq/bq
    k = proj(1)
    v = proj(2)

    # Per-head attention, batched over the batch dim with 3-D einsums.
    for h in range(num_heads):           # static unroll (heads only; L is grid)
        lo = h * head_dim
        qh = q[:, :, lo:lo + head_dim]   # (Bb, S, dh), compute dtype
        kh = k[:, :, lo:lo + head_dim]
        vh = v[:, :, lo:lo + head_dim]

        s = jnp.einsum('bqd,bkd->bqk', qh, kh,
                       preferred_element_type=jnp.float32)     # (Bb, S, S) f32
        s = s - jnp.max(s, axis=-1, keepdims=True)
        p = jnp.exp(s)
        p = p * pl.reciprocal(jnp.sum(p, axis=-1, keepdims=True), approx=True)
        # dropout(p) in eval mode == identity

        ctx = jnp.einsum('bqk,bkd->bqd', p.astype(cdt), vh,
                         preferred_element_type=jnp.float32)   # (Bb, S, dh)

        # Write this head's output directly into its lane slice of the carry
        # (== torch permute(0,2,1,3) + view back to (B, S, H)).
        o_ref[:, lo:lo + head_dim] = (
            ctx.reshape(rows, head_dim).astype(o_ref.dtype))


def _pick_batch_block(B: int, S: int, target_rows: int = 1024) -> int:
    """Largest divisor of B whose (Bb*S, H) block is legal and <= target rows.

    Prefers leaving >= 2 steps on the batch grid axis so both v7x TensorCores
    receive work under dimension_semantics=("parallel", ...).
    """
    candidates = [d for d in range(1, B + 1)
                  if B % d == 0 and (d == B or (d * S) % 8 == 0)]
    fitting = [d for d in candidates if d * S <= target_rows]
    pool = fitting if fitting else [min(candidates)]
    multi = [d for d in pool if B // d >= 2]
    return max(multi) if multi else max(pool)


def _vmem_limit_bytes(rows: int, H: int, S: int, bb: int, act_bytes: int) -> int:
    """Rough scoped-VMEM request: slabs + streamed weights + temporaries."""
    slab = rows * H * act_bytes                 # activation slab
    wblk = 3 * H * H * act_bytes                # one layer's fused weights
    bblk = 3 * H * 4
    qkv = 3 * rows * H * 4                      # f32 projection accumulators
    scores = 2 * bb * S * S * 4                 # f32 scores + probs (one head)
    est = 4 * slab + 2 * wblk + 2 * bblk + qkv + scores
    est = 2 * est + (4 << 20)                   # headroom
    return int(min(max(est, 32 * 1024 * 1024), 64 * 1024 * 1024))


def attention_stack_forward(x, params, *, num_heads: int):
    """Stack of SelfAttention layers fused into ONE pallas_call.

    x      : (B, S, H)
    params : list of (wq, wk, wv, bq, bk, bv); weights stored so y = x @ W + b
             (i.e. transposed relative to torch's nn.Linear.weight).
    """
    B, S, H = x.shape
    L = len(params)
    if H % num_heads != 0:
        raise ValueError("hidden size must be divisible by num_heads")
    dh = H // num_heads
    scale = 1.0 / math.sqrt(dh)
    cdt = x.dtype

    # (L, 3, H, H): per layer [Wq*scale, Wk, Wv] -> three lane-dense matmuls.
    w_stack = jnp.stack([
        jnp.stack([wq * scale, wk, wv], axis=0)
        for (wq, wk, wv, bq, bk, bv) in params]).astype(cdt)          # (L,3,H,H)
    # Bias stays f32 (added to the f32 accumulator; no per-layer in-kernel cast).
    b_stack = jnp.stack([
        jnp.stack([bq * scale, bk, bv], axis=0)
        for (wq, wk, wv, bq, bk, bv) in params]).astype(jnp.float32)  # (L,3,1,H)

    bb = _pick_batch_block(B, S)
    rows = bb * S
    nb = B // bb
    x2 = x.reshape(B * S, H)                     # lane/sublane-dense slab

    kernel = functools.partial(_attention_stack_kernel,
                               num_heads=num_heads, head_dim=dh, seq_len=S)

    grid_spec = pltpu.PrefetchScalarGridSpec(
        num_scalar_prefetch=0,
        grid=(nb, L),                            # layer axis innermost
        in_specs=[
            pl.BlockSpec((rows, H), lambda i, l: (i, 0)),          # input slab
            pl.BlockSpec((1, 3, H, H), lambda i, l: (l, 0, 0, 0)),  # weights/layer
            pl.BlockSpec((1, 3, 1, H), lambda i, l: (l, 0, 0, 0)),  # biases/layer
        ],
        out_specs=pl.BlockSpec((rows, H), lambda i, l: (i, 0)),     # carry/output
    )

    out2 = pl.pallas_call(
        kernel,
        out_shape=jax.ShapeDtypeStruct((B * S, H), x.dtype),
        grid_spec=grid_spec,
        compiler_params=pltpu.CompilerParams(
            dimension_semantics=("parallel", "arbitrary"),
            vmem_limit_bytes=_vmem_limit_bytes(rows, H, S, bb,
                                               jnp.dtype(cdt).itemsize)),
    )(x2, w_stack, b_stack)

    return out2.reshape(B, S, H)


def self_attention_forward(x, wq, wk, wv, bq, bk, bv, *, num_heads: int):
    """Single SelfAttention layer (the spec module), eval mode."""
    return attention_stack_forward(x, [(wq, wk, wv, bq, bk, bv)],
                                   num_heads=num_heads)


def init_params(key, hidden_size, num_layers):
    """nn.Linear-shaped params; weights stored transposed (y = x @ W + b)."""
    params = []
    for _ in range(num_layers):
        ws, bs = [], []
        for _ in range(3):  # query, key, value
            key, kw, kb = jax.random.split(key, 3)
            bound = 1.0 / math.sqrt(hidden_size)
            w = jax.random.uniform(kw, (hidden_size, hidden_size),
                                   jnp.float32, -bound, bound)
            b = jax.random.uniform(kb, (1, hidden_size),
                                   jnp.float32, -bound, bound)
            ws.append(w)
            bs.append(b)
        params.append((ws[0], ws[1], ws[2], bs[0], bs[1], bs[2]))
    return params


def _reference_forward(x, params, *, num_heads: int):
    """Pure-JAX reference mirroring the PyTorch forward (eval mode)."""
    B, S, H = x.shape
    dh = H // num_heads
    for (wq, wk, wv, bq, bk, bv) in params:
        q = x @ wq + bq
        k = x @ wk + bk
        v = x @ wv + bv

        def split_heads(t):  # (B,S,H) -> (B,nh,S,dh)
            return t.reshape(B, S, num_heads, dh).transpose(0, 2, 1, 3)

        qh, kh, vh = split_heads(q), split_heads(k), split_heads(v)
        scores = jnp.einsum("bhqd,bhkd->bhqk", qh, kh) / math.sqrt(dh)
        probs = jax.nn.softmax(scores, axis=-1)
        ctx = jnp.einsum("bhqk,bhkd->bhqd", probs, vh)
        x = ctx.transpose(0, 2, 1, 3).reshape(B, S, H)
    return x


if __name__ == "__main__":
    hidden_size = 32
    num_heads = 4
    num_layers = 2
    dropout_prob = 0.1  # inference -> identity
    B, S = 2, 8

    key = jax.random.PRNGKey(0)
    key, kx = jax.random.split(key)
    x = jax.random.normal(kx, (B, S, hidden_size), jnp.float32)

    params = init_params(key, hidden_size, num_layers)

    # 1) Single SelfAttention layer (matches the spec module exactly).
    out1 = self_attention_forward(x, *params[0], num_heads=num_heads)
    out1 = jax.block_until_ready(out1)
    ref1 = _reference_forward(x, params[:1], num_heads=num_heads)
    assert out1.shape == (B, S, hidden_size)
    assert jnp.allclose(out1, ref1, atol=1e-2, rtol=1e-2), "single-layer mismatch"

    # 2) Two stacked layers fused into one pallas_call (activations stay in VMEM,
    #    weights streamed per layer over the grid).
    out = attention_stack_forward(x, params, num_heads=num_heads)
    out = jax.block_until_ready(out)
    ref = _reference_forward(x, params, num_heads=num_heads)
    assert out.shape == (B, S, hidden_size)
    assert jnp.allclose(out, ref, atol=1e-2, rtol=1e-2), "stacked mismatch"

    print("KERNEL_OK")
</pallas_src>

<mosaic_0001>
module attributes {stable_mosaic.version = 11 : i64} {
  func.func @_attention_stack_kernel(%arg0: i32, %arg1: i32, %arg2: memref<8x32xf32, #tpu.memory_space<vmem>>, %arg3: memref<1x3x32x32xf32, #tpu.memory_space<vmem>>, %arg4: memref<1x3x1x32xf32, #tpu.memory_space<vmem>>, %arg5: memref<8x32xf32, #tpu.memory_space<vmem>>) attributes {dimension_semantics = [#tpu.dimension_semantics<parallel>, #tpu.dimension_semantics<arbitrary>], iteration_bounds = array<i64: 2, 1>, scalar_prefetch = 0 : i64, scratch_operands = 0 : i64, tpu.core_type = #tpu.core_type<tc>, window_params = [{transform_indices = @transform_0, window_bounds = array<i64: 8, 32>}, {transform_indices = @transform_1, window_bounds = array<i64: 1, 3, 32, 32>}, {transform_indices = @transform_2, window_bounds = array<i64: 1, 3, 1, 32>}, {transform_indices = @transform_3, window_bounds = array<i64: 8, 32>}]} {
    %c0_i32 = arith.constant 0 : i32
    %0 = arith.cmpi eq, %arg1, %c0_i32 : i32
    %1 = arith.extui %0 : i1 to i32
    %c0_i32_0 = arith.constant 0 : i32
    %2 = arith.cmpi ne, %1, %c0_i32_0 : i32
    scf.if %2 {
      %c0_47 = arith.constant 0 : index
      %c0_48 = arith.constant 0 : index
      %96 = vector.load %arg2[%c0_47, %c0_48] : memref<8x32xf32, #tpu.memory_space<vmem>>, vector<8x32xf32>
      %c0_49 = arith.constant 0 : index
      %c0_50 = arith.constant 0 : index
      %97 = vector.load %arg5[%c0_49, %c0_50] : memref<8x32xf32, #tpu.memory_space<vmem>>, vector<8x32xf32>
      tpu.vector_store %arg5[%c0_49, %c0_50], %96 {strides = array<i32>} : memref<8x32xf32, #tpu.memory_space<vmem>>, vector<8x32xf32>,
    } else {
    }
    %c0 = arith.constant 0 : index
    %c0_1 = arith.constant 0 : index
    %3 = vector.load %arg5[%c0, %c0_1] : memref<8x32xf32, #tpu.memory_space<vmem>>, vector<8x32xf32>
    %c0_2 = arith.constant 0 : index
    %c0_3 = arith.constant 0 : index
    %c0_4 = arith.constant 0 : index
    %c0_5 = arith.constant 0 : index
    %4 = vector.load %arg3[%c0_2, %c0_3, %c0_4, %c0_5] : memref<1x3x32x32xf32, #tpu.memory_space<vmem>>, vector<1x1x32x32xf32>
    %5 = vector.shape_cast %4 : vector<1x1x32x32xf32> to vector<32x32xf32>
    %cst = arith.constant dense<0.000000e+00> : vector<8x32xf32>
    %6 = tpu.matmul %3, %5, %cst {dimension_numbers = #tpu.dot_dimension_numbers<[1], [0], [0], [1], [0, 0, 1, 1], [], []>} : vector<8x32xf32>, vector<32x32xf32>, vector<8x32xf32> -> vector<8x32xf32>
    %c0_6 = arith.constant 0 : index
    %c0_7 = arith.constant 0 : index
    %c0_8 = arith.constant 0 : index
    %c0_9 = arith.constant 0 : index
    %7 = vector.load %arg4[%c0_6, %c0_7, %c0_8, %c0_9] : memref<1x3x1x32xf32, #tpu.memory_space<vmem>>, vector<1x1x1x32xf32>
    %8 = vector.shape_cast %7 : vector<1x1x1x32xf32> to vector<1x32xf32>
    %9 = vector.broadcast %8 : vector<1x32xf32> to vector<8x32xf32>
    %10 = arith.addf %6, %9 : vector<8x32xf32>
    %11 = vector.shape_cast %10 : vector<8x32xf32> to vector<1x8x32xf32>
    %c0_10 = arith.constant 0 : index
    %c1 = arith.constant 1 : index
    %c0_11 = arith.constant 0 : index
    %c0_12 = arith.constant 0 : index
    %12 = vector.load %arg3[%c0_10, %c1, %c0_11, %c0_12] : memref<1x3x32x32xf32, #tpu.memory_space<vmem>>, vector<1x1x32x32xf32>
    %13 = vector.shape_cast %12 : vector<1x1x32x32xf32> to vector<32x32xf32>
    %cst_13 = arith.constant dense<0.000000e+00> : vector<8x32xf32>
    %14 = tpu.matmul %3, %13, %cst_13 {dimension_numbers = #tpu.dot_dimension_numbers<[1], [0], [0], [1], [0, 0, 1, 1], [], []>} : vector<8x32xf32>, vector<32x32xf32>, vector<8x32xf32> -> vector<8x32xf32>
    %c0_14 = arith.constant 0 : index
    %c1_15 = arith.constant 1 : index
    %c0_16 = arith.constant 0 : index
    %c0_17 = arith.constant 0 : index
    %15 = vector.load %arg4[%c0_14, %c1_15, %c0_16, %c0_17] : memref<1x3x1x32xf32, #tpu.memory_space<vmem>>, vector<1x1x1x32xf32>
    %16 = vector.shape_cast %15 : vector<1x1x1x32xf32> to vector<1x32xf32>
    %17 = vector.broadcast %16 : vector<1x32xf32> to vector<8x32xf32>
    %18 = arith.addf %14, %17 : vector<8x32xf32>
    %19 = vector.shape_cast %18 : vector<8x32xf32> to vector<1x8x32xf32>
    %c0_18 = arith.constant 0 : index
    %c2 = arith.constant 2 : index
    %c0_19 = arith.constant 0 : index
    %c0_20 = arith.constant 0 : index
    %20 = vector.load %arg3[%c0_18, %c2, %c0_19, %c0_20] : memref<1x3x32x32xf32, #tpu.memory_space<vmem>>, vector<1x1x32x32xf32>
    %21 = vector.shape_cast %20 : vector<1x1x32x32xf32> to vector<32x32xf32>
    %cst_21 = arith.constant dense<0.000000e+00> : vector<8x32xf32>
    %22 = tpu.matmul %3, %21, %cst_21 {dimension_numbers = #tpu.dot_dimension_numbers<[1], [0], [0], [1], [0, 0, 1, 1], [], []>} : vector<8x32xf32>, vector<32x32xf32>, vector<8x32xf32> -> vector<8x32xf32>
    %c0_22 = arith.constant 0 : index
    %c2_23 = arith.constant 2 : index
    %c0_24 = arith.constant 0 : index
    %c0_25 = arith.constant 0 : index
    %23 = vector.load %arg4[%c0_22, %c2_23, %c0_24, %c0_25] : memref<1x3x1x32xf32, #tpu.memory_space<vmem>>, vector<1x1x1x32xf32>
    %24 = vector.shape_cast %23 : vector<1x1x1x32xf32> to vector<1x32xf32>
    %25 = vector.broadcast %24 : vector<1x32xf32> to vector<8x32xf32>
    %26 = arith.addf %22, %25 : vector<8x32xf32>
    %27 = vector.shape_cast %26 : vector<8x32xf32> to vector<1x8x32xf32>
    %28 = vector.extract_strided_slice %11 {offsets = [0, 0, 0], sizes = [1, 8, 8], strides = [1, 1, 1]} : vector<1x8x32xf32> to vector<1x8x8xf32>
    %29 = vector.extract_strided_slice %19 {offsets = [0, 0, 0], sizes = [1, 8, 8], strides = [1, 1, 1]} : vector<1x8x32xf32> to vector<1x8x8xf32>
    %30 = vector.extract_strided_slice %27 {offsets = [0, 0, 0], sizes = [1, 8, 8], strides = [1, 1, 1]} : vector<1x8x32xf32> to vector<1x8x8xf32>
    "tpu.trace_start"() <{level = 10 : i32, message = "bqd,bkd->bqk"}> : () -> ()
    %cst_26 = arith.constant dense<0.000000e+00> : vector<1x8x8xf32>
    %31 = tpu.matmul %28, %29, %cst_26 {dimension_numbers = #tpu.dot_dimension_numbers<[2], [2], [1], [1], [0, 0, 0, 1, 1, 1], [0], [0]>} : vector<1x8x8xf32>, vector<1x8x8xf32>, vector<1x8x8xf32> -> vector<1x8x8xf32>
    "tpu.trace_stop"() : () -> ()
    %cst_27 = arith.constant dense<0xFF800000> : vector<1x8xf32>
    %32 = vector.multi_reduction <maximumf>, %31, %cst_27 [2] : vector<1x8x8xf32> to vector<1x8xf32>
    %33 = vector.shape_cast %32 : vector<1x8xf32> to vector<1x8x1xf32>
    %34 = vector.broadcast %33 : vector<1x8x1xf32> to vector<1x8x8xf32>
    %35 = arith.subf %31, %34 : vector<1x8x8xf32>
    %36 = math.exp %35 : vector<1x8x8xf32>
    %cst_28 = arith.constant dense<0.000000e+00> : vector<1x8xf32>
    %37 = vector.multi_reduction <add>, %36, %cst_28 [2] : vector<1x8x8xf32> to vector<1x8xf32>
    %38 = vector.shape_cast %37 : vector<1x8xf32> to vector<1x8x1xf32>
    %39 = tpu.reciprocal %38 {approx = true} : vector<1x8x1xf32> -> vector<1x8x1xf32>
    %40 = vector.broadcast %39 : vector<1x8x1xf32> to vector<1x8x8xf32>
    %41 = arith.mulf %36, %40 : vector<1x8x8xf32>
    "tpu.trace_start"() <{level = 10 : i32, message = "bqk,bkd->bqd"}> : () -> ()
    %cst_29 = arith.constant dense<0.000000e+00> : vector<1x8x8xf32>
    %42 = tpu.matmul %41, %30, %cst_29 {dimension_numbers = #tpu.dot_dimension_numbers<[2], [1], [1], [2], [0, 0, 0, 1, 1, 2], [0], [0]>} : vector<1x8x8xf32>, vector<1x8x8xf32>, vector<1x8x8xf32> -> vector<1x8x8xf32>
    "tpu.trace_stop"() : () -> ()
    %43 = vector.shape_cast %42 : vector<1x8x8xf32> to vector<8x8xf32>
    %c0_30 = arith.constant 0 : index
    %c0_31 = arith.constant 0 : index
    %44 = vector.load %arg5[%c0_30, %c0_31] : memref<8x32xf32, #tpu.memory_space<vmem>>, vector<8x8xf32>
    tpu.vector_store %arg5[%c0_30, %c0_31], %43 {strides = array<i32>} : memref<8x32xf32, #tpu.memory_space<vmem>>, vector<8x8xf32>,
    %45 = vector.extract_strided_slice %11 {offsets = [0, 0, 8], sizes = [1, 8, 8], strides = [1, 1, 1]} : vector<1x8x32xf32> to vector<1x8x8xf32>
    %46 = vector.extract_strided_slice %19 {offsets = [0, 0, 8], sizes = [1, 8, 8], strides = [1, 1, 1]} : vector<1x8x32xf32> to vector<1x8x8xf32>
    %47 = vector.extract_strided_slice %27 {offsets = [0, 0, 8], sizes = [1, 8, 8], strides = [1, 1, 1]} : vector<1x8x32xf32> to vector<1x8x8xf32>
    "tpu.trace_start"() <{level = 10 : i32, message = "bqd,bkd->bqk"}> : () -> ()
    %cst_32 = arith.constant dense<0.000000e+00> : vector<1x8x8xf32>
    %48 = tpu.matmul %45, %46, %cst_32 {dimension_numbers = #tpu.dot_dimension_numbers<[2], [2], [1], [1], [0, 0, 0, 1, 1, 1], [0], [0]>} : vector<1x8x8xf32>, vector<1x8x8xf32>, vector<1x8x8xf32> -> vector<1x8x8xf32>
    "tpu.trace_stop"() : () -> ()
    %cst_33 = arith.constant dense<0xFF800000> : vector<1x8xf32>
    %49 = vector.multi_reduction <maximumf>, %48, %cst_33 [2] : vector<1x8x8xf32> to vector<1x8xf32>
    %50 = vector.shape_cast %49 : vector<1x8xf32> to vector<1x8x1xf32>
    %51 = vector.broadcast %50 : vector<1x8x1xf32> to vector<1x8x8xf32>
    %52 = arith.subf %48, %51 : vector<1x8x8xf32>
    %53 = math.exp %52 : vector<1x8x8xf32>
    %cst_34 = arith.constant dense<0.000000e+00> : vector<1x8xf32>
    %54 = vector.multi_reduction <add>, %53, %cst_34 [2] : vector<1x8x8xf32> to vector<1x8xf32>
    %55 = vector.shape_cast %54 : vector<1x8xf32> to vector<1x8x1xf32>
    %56 = tpu.reciprocal %55 {approx = true} : vector<1x8x1xf32> -> vector<1x8x1xf32>
    %57 = vector.broadcast %56 : vector<1x8x1xf32> to vector<1x8x8xf32>
    %58 = arith.mulf %53, %57 : vector<1x8x8xf32>
    "tpu.trace_start"() <{level = 10 : i32, message = "bqk,bkd->bqd"}> : () -> ()
    %cst_35 = arith.constant dense<0.000000e+00> : vector<1x8x8xf32>
    %59 = tpu.matmul %58, %47, %cst_35 {dimension_numbers = #tpu.dot_dimension_numbers<[2], [1], [1], [2], [0, 0, 0, 1, 1, 2], [0], [0]>} : vector<1x8x8xf32>, vector<1x8x8xf32>, vector<1x8x8xf32> -> vector<1x8x8xf32>
    "tpu.trace_stop"() : () -> ()
    %60 = vector.shape_cast %59 : vector<1x8x8xf32> to vector<8x8xf32>
    %c0_36 = arith.constant 0 : index
    %c8 = arith.constant 8 : index
    %61 = vector.load %arg5[%c0_36, %c8] : memref<8x32xf32, #tpu.memory_space<vmem>>, vector<8x8xf32>
    tpu.vector_store %arg5[%c0_36, %c8], %60 {strides = array<i32>} : memref<8x32xf32, #tpu.memory_space<vmem>>, vector<8x8xf32>,
    %62 = vector.extract_strided_slice %11 {offsets = [0, 0, 16], sizes = [1, 8, 8], strides = [1, 1, 1]} : vector<1x8x32xf32> to vector<1x8x8xf32>
    %63 = vector.extract_strided_slice %19 {offsets = [0, 0, 16], sizes = [1, 8, 8], strides = [1, 1, 1]} : vector<1x8x32xf32> to vector<1x8x8xf32>
    %64 = vector.extract_strided_slice %27 {offsets = [0, 0, 16], sizes = [1, 8, 8], strides = [1, 1, 1]} : vector<1x8x32xf32> to vector<1x8x8xf32>
    "tpu.trace_start"() <{level = 10 : i32, message = "bqd,bkd->bqk"}> : () -> ()
    %cst_37 = arith.constant dense<0.000000e+00> : vector<1x8x8xf32>
    %65 = tpu.matmul %62, %63, %cst_37 {dimension_numbers = #tpu.dot_dimension_numbers<[2], [2], [1], [1], [0, 0, 0, 1, 1, 1], [0], [0]>} : vector<1x8x8xf32>, vector<1x8x8xf32>, vector<1x8x8xf32> -> vector<1x8x8xf32>
    "tpu.trace_stop"() : () -> ()
    %cst_38 = arith.constant dense<0xFF800000> : vector<1x8xf32>
    %66 = vector.multi_reduction <maximumf>, %65, %cst_38 [2] : vector<1x8x8xf32> to vector<1x8xf32>
    %67 = vector.shape_cast %66 : vector<1x8xf32> to vector<1x8x1xf32>
    %68 = vector.broadcast %67 : vector<1x8x1xf32> to vector<1x8x8xf32>
    %69 = arith.subf %65, %68 : vector<1x8x8xf32>
    %70 = math.exp %69 : vector<1x8x8xf32>
    %cst_39 = arith.constant dense<0.000000e+00> : vector<1x8xf32>
    %71 = vector.multi_reduction <add>, %70, %cst_39 [2] : vector<1x8x8xf32> to vector<1x8xf32>
    %72 = vector.shape_cast %71 : vector<1x8xf32> to vector<1x8x1xf32>
    %73 = tpu.reciprocal %72 {approx = true} : vector<1x8x1xf32> -> vector<1x8x1xf32>
    %74 = vector.broadcast %73 : vector<1x8x1xf32> to vector<1x8x8xf32>
    %75 = arith.mulf %70, %74 : vector<1x8x8xf32>
    "tpu.trace_start"() <{level = 10 : i32, message = "bqk,bkd->bqd"}> : () -> ()
    %cst_40 = arith.constant dense<0.000000e+00> : vector<1x8x8xf32>
    %76 = tpu.matmul %75, %64, %cst_40 {dimension_numbers = #tpu.dot_dimension_numbers<[2], [1], [1], [2], [0, 0, 0, 1, 1, 2], [0], [0]>} : vector<1x8x8xf32>, vector<1x8x8xf32>, vector<1x8x8xf32> -> vector<1x8x8xf32>
    "tpu.trace_stop"() : () -> ()
    %77 = vector.shape_cast %76 : vector<1x8x8xf32> to vector<8x8xf32>
    %c0_41 = arith.constant 0 : index
    %c16 = arith.constant 16 : index
    %78 = vector.load %arg5[%c0_41, %c16] : memref<8x32xf32, #tpu.memory_space<vmem>>, vector<8x8xf32>
    tpu.vector_store %arg5[%c0_41, %c16], %77 {strides = array<i32>} : memref<8x32xf32, #tpu.memory_space<vmem>>, vector<8x8xf32>,
    %79 = vector.extract_strided_slice %11 {offsets = [0, 0, 24], sizes = [1, 8, 8], strides = [1, 1, 1]} : vector<1x8x32xf32> to vector<1x8x8xf32>
    %80 = vector.extract_strided_slice %19 {offsets = [0, 0, 24], sizes = [1, 8, 8], strides = [1, 1, 1]} : vector<1x8x32xf32> to vector<1x8x8xf32>
    %81 = vector.extract_strided_slice %27 {offsets = [0, 0, 24], sizes = [1, 8, 8], strides = [1, 1, 1]} : vector<1x8x32xf32> to vector<1x8x8xf32>
    "tpu.trace_start"() <{level = 10 : i32, message = "bqd,bkd->bqk"}> : () -> ()
    %cst_42 = arith.constant dense<0.000000e+00> : vector<1x8x8xf32>
    %82 = tpu.matmul %79, %80, %cst_42 {dimension_numbers = #tpu.dot_dimension_numbers<[2], [2], [1], [1], [0, 0, 0, 1, 1, 1], [0], [0]>} : vector<1x8x8xf32>, vector<1x8x8xf32>, vector<1x8x8xf32> -> vector<1x8x8xf32>
    "tpu.trace_stop"() : () -> ()
    %cst_43 = arith.constant dense<0xFF800000> : vector<1x8xf32>
    %83 = vector.multi_reduction <maximumf>, %82, %cst_43 [2] : vector<1x8x8xf32> to vector<1x8xf32>
    %84 = vector.shape_cast %83 : vector<1x8xf32> to vector<1x8x1xf32>
    %85 = vector.broadcast %84 : vector<1x8x1xf32> to vector<1x8x8xf32>
    %86 = arith.subf %82, %85 : vector<1x8x8xf32>
    %87 = math.exp %86 : vector<1x8x8xf32>
    %cst_44 = arith.constant dense<0.000000e+00> : vector<1x8xf32>
    %88 = vector.multi_reduction <add>, %87, %cst_44 [2] : vector<1x8x8xf32> to vector<1x8xf32>
    %89 = vector.shape_cast %88 : vector<1x8xf32> to vector<1x8x1xf32>
    %90 = tpu.reciprocal %89 {approx = true} : vector<1x8x1xf32> -> vector<1x8x1xf32>
    %91 = vector.broadcast %90 : vector<1x8x1xf32> to vector<1x8x8xf32>
    %92 = arith.mulf %87, %91 : vector<1x8x8xf32>
    "tpu.trace_start"() <{level = 10 : i32, message = "bqk,bkd->bqd"}> : () -> ()
    %cst_45 = arith.constant dense<0.000000e+00> : vector<1x8x8xf32>
    %93 = tpu.matmul %92, %81, %cst_45 {dimension_numbers = #tpu.dot_dimension_numbers<[2], [1], [1], [2], [0, 0, 0, 1, 1, 2], [0], [0]>} : vector<1x8x8xf32>, vector<1x8x8xf32>, vector<1x8x8xf32> -> vector<1x8x8xf32>
    "tpu.trace_stop"() : () -> ()
    %94 = vector.shape_cast %93 : vector<1x8x8xf32> to vector<8x8xf32>
    %c0_46 = arith.constant 0 : index
    %c24 = arith.constant 24 : index
    %95 = vector.load %arg5[%c0_46, %c24] : memref<8x32xf32, #tpu.memory_space<vmem>>, vector<8x8xf32>
    tpu.vector_store %arg5[%c0_46, %c24], %94 {strides = array<i32>} : memref<8x32xf32, #tpu.memory_space<vmem>>, vector<8x8xf32>,
    return
  }
  func.func @transform_0(%arg0: i32, %arg1: i32) -> (i32, i32) {
    %c0_i32 = arith.constant 0 : i32
    %c0_i32_0 = arith.constant 0 : i32
    return %arg0, %c0_i32 : i32, i32
  }
  func.func @transform_1(%arg0: i32, %arg1: i32) -> (i32, i32, i32, i32) {
    %c0_i32 = arith.constant 0 : i32
    %c0_i32_0 = arith.constant 0 : i32
    %c0_i32_1 = arith.constant 0 : i32
    %c0_i32_2 = arith.constant 0 : i32
    return %arg1, %c0_i32, %c0_i32_0, %c0_i32_1 : i32, i32, i32, i32
  }
  func.func @transform_2(%arg0: i32, %arg1: i32) -> (i32, i32, i32, i32) {
    %c0_i32 = arith.constant 0 : i32
    %c0_i32_0 = arith.constant 0 : i32
    %c0_i32_1 = arith.constant 0 : i32
    %c0_i32_2 = arith.constant 0 : i32
    return %arg1, %c0_i32, %c0_i32_0, %c0_i32_1 : i32, i32, i32, i32
  }
  func.func @transform_3(%arg0: i32, %arg1: i32) -> (i32, i32) {
    %c0_i32 = arith.constant 0 : i32
    %c0_i32_0 = arith.constant 0 : i32
    return %arg0, %c0_i32 : i32, i32
  }
}

</mosaic_0001>

<bundles_post_ra>
// kernel: tpu_custom_call.1
= control target key start
LH: loop header
LB: loop body
LE: loop exit
PB: predicated region body
PF: predicated region fallthrough
CT: control target
= control target key end

     0   :  { %8 = vsyncpa [#allocation3], 0  ;;  %s1977_s0 = inlined_call_operand.hbm [shape: f32[16,32], index: 0, kind: input, shape index: {}]   ;;  %s1978_s1 = inlined_call_operand.hbm [shape: f32[1,3,32,32], index: 1, kind: input, shape index: {}]   ;;  %s1979_s2 = inlined_call_operand.vmem [shape: f32[1,3,1,32], index: 2, kind: input, shape index: {}]   ;;  %s1980_s3 = inlined_call_operand.hbm [shape: f32[16,32], index: 3, kind: output, shape index: {}]  }
   0x1   :  { %10 = vsyncpa [#allocation3 + $0x1], 0 }
   0x2   :  { %11 = vsyncpa [#allocation6], 0 }
   0x3   :  { %12 = vsyncpa [#allocation4], 0 }
   0x4   :  { %14 = vsyncpa [#allocation4 + $0x1], 0  ;;  %s1704_s12 = smov 0   ;;  %s1706_s13 = smov 0  }
   0x5   :  { %s1708_s14 = smov 0   ;;  %s1710_s15 = smov 0  }
   0x6   :  { %s1712_s16 = smov 0   ;;  %s1714_s17 = smov 0  }
   0x7 LB: > { %s1292_s18 = sadd.s32 4294967295, %s1669_s17   ;;  %s1293_s19 = sadd.s32 4294967294, %s1669_s17   ;;  %s1669_s17 = sphi %s1714_s17, %s20_s17   ;;  %s1665_s16 = sphi %s1712_s16, %s1998_s16   ;;  %s1661_s15 = sphi %s1710_s15, %s1997_s15   ;;  %s1657_s14 = sphi %s1708_s14, %s1996_s14   ;;  %s1653_s13 = sphi %s1706_s13, %s1995_s13   ;;  %s1649_s12 = sphi %s1704_s12, %s1994_s12  }
   0x8   : > { %p52_p0 = scmp.ne.s32.totalorder %s1653_s13, %s1649_s12  ;;  %p1738_p1 = scmp.eq.s32.totalorder %s1292_s18, 0 }
   0x9   : > { %p1742_p2 = scmp.eq.s32.totalorder %s1292_s18, 1  ;;  %p134_p3 = scmp.eq.s32.totalorder %s1293_s19, 1 }
   0xa   : > { %p1748_p4 = por %p1738_p1, %p52_p0  ;;  %p1294_p5 = scmp.ge.s32.totalorder %s1669_s17, 1 }
   0xb   : > { %p1753_p6 = por %p134_p3, %p52_p0  ;;  %p141_p7 = scmp.lt.s32.totalorder %s1669_s17, 3 }
   0xc   : > { %s1984_s22 = scalar_select %p1748_p4, 1, 0 }
   0xd   : > { %s1985_s23 = scalar_select %p1753_p6, 1, 0 }
   0xe   : > { %p1758_p8 = pnand %p1294_p5, %p141_p7  ;;  %s1671_s25 = smov [#allocation5]  }
   0xf   : > { %s156_s26 = sshll.u32 %s1671_s25, 4  ;;  %s32_s28 = sadd.s32 1, %s1665_s16  ;;  %s157_s26 = int_to_ptr.vmem [resolvable:$true] %s156_s26 }
  0x10   : > { %p1440_p9 = pneg %p1758_p8  ;;  %s1542_s29 = scalar_lea.vmem %s157_s26, 1536 }
  0x11   : > { %p1543_p13 = scmp.ne.s32.totalorder %s157_s26, %s1542_s29  ;;  %p1550_p5 = scmp.lt.s32.totalorder %s157_s26, %s157_s26 }
  0x12   : > { %p1767_p11 = pnand %p1440_p9, %p1738_p1  ;;  %p1551_p7 = scmp.lt.s32.totalorder %s1542_s29, %s1542_s29 }
  0x14   : > { %p1533_p12 = pneg %p1767_p11  ;;  %p1552_p6 = por %p1551_p7, %p1550_p5 }
  0x16   : > { %p1545_p0 = pnand %p1543_p13, %p1533_p12 }
  0x18   : > { %p1546_p3 = pneg %p1545_p0 }
  0x1a   : > { %p1553_p4 = pnand %p1552_p6, %p1546_p3 }
  0x1c   : > { %1556 = shalt.err (!%p1553_p4)
}
  0x1d   : > { %s1672_s30 = smov 128   ;;  %s1673_s4 = smov 8  }
  0x1e   : > { %1443 = dma.hbm_to_vmem [thread:$0]  (!%p1767_p11), %s1978_s1, 1536, %s157_s26, [#allocation6], %s1672_s30, %s1672_s30, %s1673_s4  }
  0x1f   : > { %p34_p6 = scmp.ge.s32.totalorder %s32_s28, 2  ;;  %s39_s7 = sadd.s32 1, %s1657_s14 }
  0x20   : > { %p46_p4 = scmp.ne.s32.totalorder %s1657_s14, %s1653_s13  ;;  %p47_p9 = scmp.eq.s32.totalorder %s1669_s17, 0 }
  0x21   : > { %s2000_s28 = smov (%p34_p6, %s32_s28), 0  ;;  %p1453_p0 = scmp.lt.s32.totalorder %s1669_s17, 2 }
  0x22   : > { %p1785_p12 = por %p47_p9, %p46_p4  ;;  %p1791_p13 = por %p1742_p2, %p46_p4 }
  0x23   : > { %s36_s10 = ssub.s32 %s1665_s16, %s2000_s28  ;;  %s177_s11 = sand.u32 1, %s1657_s14  }
  0x24   : > { %p37_p11 = scmp.eq.s32.totalorder %s36_s10, 0  ;;  %s1298_s18 = sshll.u32 %s177_s11, 3 }
  0x25   : > { %s1299_s25 = sshll.u32 %s1665_s16, 7  ;;  %s181_s30 = scalar_lea.vmem [#allocation2], %s1298_s18 }
  0x26   : > { %s1800_s19 = scalar_select %p37_p11, %s1657_s14, %s39_s7  }
  0x27   : > { %s186_s29 = scalar_lea.hbm %s1977_s0, %s1299_s25  ;;  %s188_s4 = sshll.u32 %s181_s30, 4  ;;  %s189_s4 = int_to_ptr.vmem [resolvable:$true] %s188_s4 }
  0x28   : > { %p1808_p2 = pnand %p1453_p0, %p1785_p12  ;;  %s178_s5 = scalar_lea.sflag [#allocation3], %s177_s11 }
  0x29   : > { %s1570_s6 = scalar_lea.vmem %s189_s4, 128  ;;  %s1674_s7 = smov [#allocation2]  }
  0x2a   : > { %p1559_p3 = pneg %p1808_p2  ;;  %p1571_p5 = scmp.ne.s32.totalorder %s189_s4, %s1570_s6 }
  0x2b   : > { %s1575_s10 = sshll.u32 %s1674_s7, 4  ;;  %s1576_s10 = int_to_ptr.vmem [resolvable:$false] %s1575_s10 }
  0x2c   : > { %p1573_p7 = pnand %p1571_p5, %p1559_p3  ;;  %s1577_s25 = scalar_lea.vmem %s1576_s10, 256 }
  0x2d   : > { %p1578_p4 = scmp.lt.s32.totalorder %s189_s4, %s1576_s10  ;;  %p1579_p9 = scmp.lt.s32.totalorder %s1577_s25, %s1570_s6 }
  0x2e   : > { %p1574_p6 = pneg %p1573_p7 }
  0x2f   : > { %p1580_p11 = por %p1579_p9, %p1578_p4 }
  0x31   : > { %p1581_p10 = pnand %p1580_p11, %p1574_p6 }
  0x33   : > { %1584 = shalt.err (!%p1581_p10)
}
  0x34   : > { %1447 = dma.hbm_to_vmem [thread:$0]  (!%p1808_p2), %s186_s29, 128, %s189_s4, %s178_s5  }
  0x35   : > { %197 = sbr.rel (%p1758_p8) target bundleno = 1221 (0x4c5), region = 32  ;;  %s1819_s8 = sand.u32 (!%p1758_p8), 1, %s1653_s13  }
  0x36   : > { %s1301_s11 = sshll.u32 (!%p1758_p8), %s1819_s8, 3  ;;  %s200_s18 = scalar_lea.sflag (!%p1758_p8), [#allocation3], %s1819_s8 }
  0x37   : > { %s203_s26 = scalar_lea.vmem (!%p1758_p8), [#allocation2], %s1301_s11  ;;  %p1991_p12 = scmp.ne.s32.totalorder (!%p1758_p8), %s1984_s22, 0 }
  0x3a   : > { %1636 = dma.done.wait (%p1991_p12), %s200_s18, 128  }
  0x3b   : > { %1638 = vsyncadd (%p1991_p12), %s200_s18, 4294967168 }
  0x3c   : > { %1640 = dma.done.wait (%p1738_p1), [#allocation6], 1536  }
  0x3d   : > { %1642 = vsyncadd (%p1738_p1), [#allocation6], 4294965760  ;;  %v1675_v0 = vmov 0.0   ;;  %vm1676_vm0 = vmmov 0   ;;  %v335_v1 = vld [vmem:[#allocation5 + $0x38] sm:$0xff]  ;;  %v334_v3 = vld [vmem:[#allocation5 + $0x30] sm:$0xff] }
  0x3e   : > { %1370 = vmatprep.subr.mxu1 %v1675_v0  ;;  %1359 = vmatprep.subr.mxu0 %v1675_v0  ;;  %v249_v2 = vld [vmem:[#allocation5 + $0x18] sm:$0xff]  ;;  %vm243_vm1 = vcmask 261120   ;;  %v248_v4 = vld [vmem:[#allocation5 + $0x10] sm:$0xff]  ;;  %v333_v5 = vld [vmem:[#allocation5 + $0x28] sm:$0xff]  ;;  %s1839_s20 = scalar_lea.vmem [#allocation7], %s1301_s11  ;;  %vm497_vm2 = vcmask 64512  }
  0x3f   : > { %1378 = vmatprep.mubr.msk.f32.mxu1 %vm1676_vm0, %v1675_v0  ;;  %1367 = vmatprep.mubr.msk.f32.mxu0 %vm1676_vm0, %v1675_v0  ;;  %v247_v6 = vld [vmem:[#allocation5 + $0x8] sm:$0xff]  ;;  %v242_v7 = vld [vmem:[%s203_s26] sm:$0xff]  ;;  %v332_v8 = vld [vmem:[#allocation5 + $0x20] sm:$0xff]  ;;  %s1677_s30 = smov 112   ;;  %s1678_s4 = smov 120   ;;  %vm829_vm3 = vcmask 130112  }
  0x40   : > { %1371 = vmatpush3.msra.mxu1 %v335_v1  ;;  %1360 = vmatpush3.msra.mxu0 %v249_v2  ;;  %244 = vst.msk [vmem:[%s1839_s20] sm:$0xff] %vm243_vm1, %v242_v7  ;;  %v246_v9 = vld [vmem:[#allocation5] sm:$0xff]  ;;  %v418_v11 = vld [vmem:[#allocation5 + $0x58] sm:$0xff]  ;;  %v417_v12 = vld [vmem:[#allocation5 + $0x50] sm:$0xff]  ;;  %s1679_s21 = smov 104   ;;  %s1680_s7 = smov 8  }
  0x41   : > { %1372 = vmatprep.subr.mxu1 %v1675_v0  ;;  %1361 = vmatprep.subr.mxu0 %v1675_v0  ;;  %v416_v13 = vld [vmem:[#allocation5 + $0x48] sm:$0xff]  ;;  %v415_v14 = vld [vmem:[#allocation5 + $0x40] sm:$0xff]  ;;  %v1307_v15 = vld [vmem:[%s1979_s2 + $0x1] ss:$0 sm:$0xff]  ;;  %s1681_s10 = smov 16   ;;  %s1682_s25 = smov 24  }
  0x42   : > { %1373 = vmatpush3.msra.mxu1 %v334_v3  ;;  %1362 = vmatpush3.msra.mxu0 %v248_v4  ;;  %v1304_v17 = vld [vmem:[%s1979_s2] ss:$0 sm:$0xff]  ;;  %v1310_v23 = vld [vmem:[%s1979_s2 + $0x2] ss:$0 sm:$0xff]  ;;  %vm1000_vm4 = vcmask 195712   ;;  %s1325_s11 = sshll.u32 %s1661_s15, 7 }
  0x43   : > { %1374 = vmatprep.subr.mxu1 %v1675_v0  ;;  %1363 = vmatprep.subr.mxu0 %v1675_v0  ;;  %s1187_s18 = sshll.u32 %s1839_s20, 4  ;;  %vm1171_vm5 = vcmask 261312   ;;  %s1934_s24 = scalar_lea.hbm %s1980_s3, %s1325_s11  ;;  %s1188_s18 = int_to_ptr.vmem [resolvable:$true] %s1187_s18 }
  0x44   : > { %1375 = vmatpush3.msra.mxu1 %v333_v5  ;;  %1364 = vmatpush3.msra.mxu0 %v247_v6  ;;  %s1174_s27 = scalar_lea.sflag [#allocation4], %s1819_s8  ;;  %s1585_s29 = scalar_lea.vmem %s1188_s18, 128 }
  0x45   : > { %1376 = vmatprep.subr.mxu1 %v1675_v0  ;;  %1365 = vmatprep.subr.mxu0 %v1675_v0  ;;  %p1586_p1 = scmp.ne.s32.totalorder %s1188_s18, %s1585_s29 }
  0x46   : > { %1377 = vmatpush3.msra.mxu1 %v332_v8  ;;  %1366 = vmatpush3.msra.mxu0 %v246_v9 }
  0x47   : > { %1392 = vmatprep.subr.mxu1 %v1675_v0  ;;  %1381 = vmatprep.subr.mxu0 %v1675_v0  ;;  %v245_v10 = vld [vmem:[%s1839_s20] sm:$0xff]  ;;  %p1587_p8 = pnand %p1586_p1, %p1791_p13 }
  0x48   : > { %1379 = vmatmul.mubr.msk.f32.vlgmr.msra.gmra.mxu1 %vm243_vm1, %v245_v10  ;;  %1368 = vmatmul.mubr.msk.f32.vlgmr.msra.gmra.mxu0 %vm243_vm1, %v245_v10 }
  0x49   : > { %1394 = vmatprep.mubr.msk.f32.mxu1 %vm1676_vm0, %v1675_v0  ;;  %1389 = vmatprep.mubr.msk.f32.mxu0 %vm1676_vm0, %v1675_v0  ;;  %p1588_p10 = pneg %p1587_p8 }
  0x4a   : > { %1382 = vmatpush3.msra.mxu0 %v418_v11 }
  0x4b   : > { %1383 = vmatprep.subr.mxu0 %v1675_v0 }
  0x4c   : > { %1384 = vmatpush3.msra.mxu0 %v417_v12 }
  0x4d   : > { %1385 = vmatprep.subr.mxu0 %v1675_v0 }
  0x4e   : > { %1386 = vmatpush3.msra.mxu0 %v416_v13 }
  0x4f   : > { %1387 = vmatprep.subr.mxu0 %v1675_v0 }
  0x50   : > { %1388 = vmatpush3.msra.mxu0 %v415_v14 }
  0x51   : > { %1390 = vmatmul.mubr.msk.f32.vlgmr.msra.gmra.mxu0 %vm243_vm1, %v245_v10  ;;  %1402 = vmatprep.subr.mxu0 %v1675_v0 }
  0x52   : > { %1404 = vmatprep.mubr.msk.f32.mxu0 %vm1676_vm0, %v1675_v0 }
 0x108   : > { %v410_v16 = vpop.f32.mrf.mxu1  ;;  %v327_v18 = vpop.f32.mrf.mxu0 }
 0x109   : > { %v411_v19 = vadd.f32 %v1307_v15, %v410_v16  ;;  %v328_v22 = vadd.f32 %v1304_v17, %v327_v18 }
 0x10a   : > { %v1380_v20 = vpop.f32.mrf.mxu1  ;;  %v1369_v21 = vpop.f32.mrf.mxu0 }
 0x10b   : > { %833 = vrot.lane.b32.xlu1 %v411_v19, %s1677_s30  ;;  %661 = vrot.lane.b32.xlu0 %v411_v19, %s1678_s4 }
 0x10c   : > { %1393 = vmatpush3.xpose.msk.msra.mxu1 %vm497_vm2, %v411_v19 }
 0x10d   : > { %1397 = vmatprep.subr.mxu1 %v1675_v0 }
 0x10f   : > { %1395 = vmatmul.mubr.msk.f32.vlgmr.msra.gmra.mxu1 %vm497_vm2, %v328_v22  ;;  %831 = vrot.lane.b32.xlu1 %v328_v22, %s1677_s30 }
 0x110   : > { %659 = vrot.lane.b32.xlu0 %v328_v22, %s1678_s4  ;;  %1399 = vmatprep.mubr.msk.f32.mxu1 %vm1676_vm0, %v1675_v0 }
 0x111   : > { %v493_v24 = vpop.f32.mrf.mxu0 }
 0x112   : > { %v1883_v25 = vadd.f32 %v1310_v23, %v493_v24 }
 0x113   : > { %1002 = vrot.lane.b32.xlu1 %v328_v22, %s1679_s21  ;;  %v1391_v26 = vpop.f32.mrf.mxu0 }
 0x114   : > { %1004 = vrot.lane.b32.xlu0 %v411_v19, %s1679_s21  ;;  %1398 = vmatpush3.msra.mxu1 %v1883_v25 }
 0x115   : > { %1407 = vmatprep.subr.mxu1 %v1675_v0 }
 0x17d   : > { %v662_v27 = vpop.permute.xlu0 %661  ;;  %v834_v28 = vpop.permute.xlu1 %833 }
 0x17e   : > { %1403 = vmatpush3.xpose.msk.msra.mxu0 %vm497_vm2, %v662_v27 }
 0x17f   : > { %1412 = vmatprep.subr.mxu0 %v1675_v0 }
 0x181   : > { %v832_v30 = vpop.permute.xlu1 %831 }
 0x182   : > { %v660_v29 = vpop.permute.xlu0 %659 }
 0x183   : > { %1405 = vmatmul.mubr.msk.f32.vlgmr.msra.gmra.mxu0 %vm497_vm2, %v660_v29 }
 0x184   : > { %1413 = vmatpush3.xpose.msk.msra.mxu0 %vm497_vm2, %v834_v28  ;;  %1414 = vmatprep.mubr.msk.f32.mxu0 %vm1676_vm0, %v1675_v0 }
 0x185   : > { %1422 = vmatprep.subr.mxu0 %v1675_v0  ;;  %v1003_v32 = vpop.permute.xlu1 %1002 }
 0x186   : > { %v1005_v31 = vpop.permute.xlu0 %1004 }
 0x187   : > { %1415 = vmatmul.mubr.msk.f32.vlgmr.msra.gmra.mxu0 %vm497_vm2, %v832_v30 }
 0x188   : > { %1423 = vmatpush3.xpose.msk.msra.mxu0 %vm497_vm2, %v1005_v31  ;;  %1424 = vmatprep.mubr.msk.f32.mxu0 %vm1676_vm0, %v1675_v0 }
 0x18b   : > { %1425 = vmatmul.mubr.msk.f32.vlgmr.msra.gmra.mxu0 %vm497_vm2, %v1003_v32 }
 0x1cf   : > { %v570_v33 = vpop.f32.mrf.mxu1 }
 0x1d0   : > { %v574_v34 = vsel %vm497_vm2, %v570_v33, -inf }
 0x1d1   : > { %575 = vmax.xlane.f32.xlu0 %v574_v34  ;;  %v1396_v35 = vpop.f32.mrf.mxu1 }
 0x243   : > { %v733_v36 = vpop.f32.mrf.mxu0 }
 0x244   : > { %v737_v37 = vsel %vm497_vm2, %v733_v36, -inf }
 0x245   : > { %738 = vmax.xlane.f32.xlu1 %v737_v37  ;;  %v1406_v38 = vpop.f32.mrf.mxu0 }
 0x247   : > { %v905_v39 = vpop.f32.mrf.mxu0 }
 0x248   : > { %v909_v40 = vsel %vm497_vm2, %v905_v39, -inf }
 0x249   : > { %910 = vmax.xlane.f32.xlu0 %v909_v40  ;;  %v1416_v41 = vpop.f32.mrf.mxu0 }
 0x24b   : > { %v1076_v42 = vpop.f32.mrf.mxu0 }
 0x24c   : > { %v1080_v43 = vsel %vm497_vm2, %v1076_v42, -inf }
 0x24d   : > { %1081 = vmax.xlane.f32.xlu0 %v1080_v43  ;;  %v1426_v44 = vpop.f32.mrf.mxu0 }
 0x256   : > { %749 = vrot.lane.b32.xlu1 %v1883_v25, %s1678_s4 }
 0x25a   : > { %v576_v45 = vpop.xlane.xlu0 %575 }
 0x25b   : > { %v577_v46 = vsub.f32 %v570_v33, %v576_v45 }
 0x25d   : > { %v578_v47 = vmul.f32 1.442695, %v577_v46 }
 0x25f   : > { %1515 = vpow2.f32 %v578_v47 }
 0x26c   : > { %v1516_v48 = vpop.eup %1515 }
 0x26d   : > { %v580_v49 = vsel %vm497_vm2, %v1516_v48, 0.0 }
 0x27a   : > { %581 = vadd.xlane.f32.xlu1 %v580_v49 }
 0x2ce   : > { %v739_v50 = vpop.xlane.xlu1 %738 }
 0x2cf   : > { %v740_v51 = vsub.f32 %v733_v36, %v739_v50 }
 0x2d1   : > { %v741_v52 = vmul.f32 1.442695, %v740_v51 }
 0x2d2   : > { %v911_v53 = vpop.xlane.xlu0 %910  ;;  %v750_v2 = vpop.permute.xlu1 %749 }
 0x2d3   : > { %1517 = vpow2.f32 %v741_v52  ;;  %v912_v54 = vsub.f32 %v905_v39, %v911_v53 }
 0x2d5   : > { %v913_v55 = vmul.f32 1.442695, %v912_v54 }
 0x2d6   : > { %v1082_v56 = vpop.xlane.xlu0 %1081 }
 0x2d7   : > { %1519 = vpow2.f32 %v913_v55  ;;  %v1083_v57 = vsub.f32 %v1076_v42, %v1082_v56 }
 0x2d9   : > { %v1084_v58 = vmul.f32 1.442695, %v1083_v57 }
 0x2db   : > { %1521 = vpow2.f32 %v1084_v58 }
 0x2e0   : > { %v1518_v59 = vpop.eup %1517 }
 0x2e1   : > { %v743_v60 = vsel %vm497_vm2, %v1518_v59, 0.0 }
 0x2e2   : > { %744 = vadd.xlane.f32.xlu0 %v743_v60 }
 0x2e4   : > { %v1520_v61 = vpop.eup %1519 }
 0x2e5   : > { %v915_v62 = vsel %vm497_vm2, %v1520_v61, 0.0 }
 0x2e6   : > { %916 = vadd.xlane.f32.xlu1 %v915_v62 }
 0x2e8   : > { %v1522_v63 = vpop.eup %1521 }
 0x2e9   : > { %v1086_v1 = vsel %vm497_vm2, %v1522_v63, 0.0 }
 0x2ea   : > { %1087 = vadd.xlane.f32.xlu0 %v1086_v1 }
 0x2f7   : > { %1091 = vrot.lane.b32.xlu1 %v1883_v25, %s1679_s21 }
 0x300   : > { %920 = vrot.lane.b32.xlu0 %v1883_v25, %s1677_s30  ;;  %s1683_s30 = smov [#allocation7]  }
 0x301   : > { %s1589_s4 = sshll.u32 %s1683_s30, 4  ;;  %s1590_s4 = int_to_ptr.vmem [resolvable:$false] %s1589_s4 }
 0x302   : > { %s1591_s15 = scalar_lea.vmem %s1590_s4, 256  ;;  %p1592_p0 = scmp.lt.s32.totalorder %s1188_s18, %s1590_s4 }
 0x303   : > { %v582_v3 = vpop.xlane.xlu1 %581  ;;  %p1593_p2 = scmp.lt.s32.totalorder %s1591_s15, %s1585_s29 }
 0x304   : > { %1523 = vrcp.f32 %v582_v3 }
 0x305   : > { %p1594_p3 = por %p1593_p2, %p1592_p0 }
 0x307   : > { %p1595_p5 = pnand %p1594_p3, %p1588_p10 }
 0x311   : > { %v1524_v4 = vpop.eup %1523 }
 0x312   : > { %v584_v5 = vmul.f32 %v1524_v4, %v1516_v48 }
 0x314   : > { %1400 = vmatmul.mubr.msk.f32.vlgmr.msra.gmra.mxu1 %vm497_vm2, %v584_v5 }
 0x315   : > { %1408 = vmatpush3.msra.mxu1 %v750_v2  ;;  %1409 = vmatprep.mubr.msk.f32.mxu1 %vm1676_vm0, %v1675_v0 }
 0x316   : > { %1417 = vmatprep.subr.mxu1 %v1675_v0 }
 0x36b   : > { %v745_v6 = vpop.xlane.xlu0 %744 }
 0x36c   : > { %1525 = vrcp.f32 %v745_v6 }
 0x36f   : > { %v917_v7 = vpop.xlane.xlu1 %916 }
 0x370   : > { %1527 = vrcp.f32 %v917_v7 }
 0x373   : > { %v1088_v8 = vpop.xlane.xlu0 %1087  ;;  %v1092_v14 = vpop.permute.xlu1 %1091 }
 0x374   : > { %1529 = vrcp.f32 %v1088_v8 }
 0x377   : > { %v921_v11 = vpop.permute.xlu0 %920 }
 0x379   : > { %v1526_v9 = vpop.eup %1525 }
 0x37a   : > { %v747_v10 = vmul.f32 %v1526_v9, %v1518_v59 }
 0x37c   : > { %1410 = vmatmul.mubr.msk.f32.vlgmr.msra.gmra.mxu1 %vm497_vm2, %v747_v10 }
 0x37d   : > { %v1528_v12 = vpop.eup %1527  ;;  %1418 = vmatpush3.msra.mxu1 %v921_v11  ;;  %1419 = vmatprep.mubr.msk.f32.mxu1 %vm1676_vm0, %v1675_v0 }
 0x37e   : > { %1427 = vmatprep.subr.mxu1 %v1675_v0  ;;  %v919_v13 = vmul.f32 %v1528_v12, %v1520_v61 }
 0x380   : > { %1420 = vmatmul.mubr.msk.f32.vlgmr.msra.gmra.mxu1 %vm497_vm2, %v919_v13 }
 0x381   : > { %v1530_v15 = vpop.eup %1529  ;;  %1428 = vmatpush3.msra.mxu1 %v1092_v14  ;;  %1429 = vmatprep.mubr.msk.f32.mxu1 %vm1676_vm0, %v1675_v0 }
 0x382   : > { %v1090_v16 = vmul.f32 %v1530_v15, %v1522_v63 }
 0x384   : > { %1430 = vmatmul.mubr.msk.f32.vlgmr.msra.gmra.mxu1 %vm497_vm2, %v1090_v16 }
 0x3d4   : > { %v654_v17 = vpop.f32.mrf.mxu1 }
 0x3d5   : > { %658 = vst.msk [vmem:[%s1839_s20] sm:$0xff] %vm497_vm2, %v654_v17 }
 0x3d6   : > { %v1401_v18 = vpop.f32.mrf.mxu1 }
 0x43c   : > { %v821_v19 = vpop.f32.mrf.mxu1 }
 0x43d   : > { %826 = vrot.lane.b32.xlu1 %v821_v19, %s1680_s7 }
 0x43e   : > { %v1411_v20 = vpop.f32.mrf.mxu1 }
 0x440   : > { %v992_v21 = vpop.f32.mrf.mxu1 }
 0x441   : > { %997 = vrot.lane.b32.xlu0 %v992_v21, %s1681_s10 }
 0x442   : > { %v1421_v22 = vpop.f32.mrf.mxu1 }
 0x444   : > { %v1163_v0 = vpop.f32.mrf.mxu1 }
 0x445   : > { %1168 = vrot.lane.b32.xlu1 %v1163_v0, %s1682_s25 }
 0x446   : > { %v1431_v23 = vpop.f32.mrf.mxu1 }
 0x4af   : > { %v827_v24 = vpop.permute.xlu1 %826 }
 0x4b0   : > { %830 = vst.msk [vmem:[%s1839_s20] sm:$0xff] %vm829_vm3, %v827_v24 }
 0x4b3   : > { %v998_v25 = vpop.permute.xlu0 %997 }
 0x4b4   : > { %1001 = vst.msk [vmem:[%s1839_s20] sm:$0xff] %vm1000_vm4, %v998_v25 }
 0x4b7   : > { %v1169_v26 = vpop.permute.xlu1 %1168 }
 0x4b8   : > { %1172 = vst.msk [vmem:[%s1839_s20] sm:$0xff] %vm1171_vm5, %v1169_v26 }
 0x4b9   : > { %1598 = shalt.err (!%p1595_p5)
}
 0x4ba   : > { %s1599_s20 = scalar_lea.hbm %s1934_s24, 128  ;;  %s1603_s5 = scalar_lea.hbm %s1980_s3, 256 }
 0x4bb   : > { %p1600_p7 = scmp.ne.s32.totalorder %s1934_s24, %s1599_s20  ;;  %p1604_p9 = scmp.lt.s32.totalorder %s1934_s24, %s1980_s3 }
 0x4bc   : > { %p1605_p11 = scmp.lt.s32.totalorder %s1603_s5, %s1599_s20 }
 0x4bd   : > { %p1601_p6 = pnand %p1600_p7, %p1791_p13 }
 0x4be   : > { %p1606_p12 = por %p1605_p11, %p1604_p9 }
 0x4bf   : > { %p1602_p4 = pneg %p1601_p6 }
 0x4c1   : > { %p1607_p1 = pnand %p1606_p12, %p1602_p4 }
 0x4c3   : > { %1610 = shalt.err (!%p1607_p1)
}
 0x4c4   : > { %1438 = dma.vmem_to_hbm [thread:$0]  (%p1791_p13), %s1188_s18, 128, %s1934_s24, %s1174_s27  }
 0x4c5 PF: > { %s1199_s10 = sand.u32 1, %s1649_s12   ;;  %p1992_p8 = scmp.ne.s32.totalorder %s1985_s23, 0 }
 0x4c6   : > { %p1993_p10 = scmp.ge.s32.totalorder %s1669_s17, 2  ;;  %s1200_s25 = scalar_lea.sflag [#allocation4], %s1199_s10 }
 0x4c8   : > { %p1449_p0 = pnand %p1993_p10, %p1992_p8 }
 0x4ca   : > { %p1450_p2 = pneg %p1449_p0 }
 0x4cc   : > { %1644 = dma.done.wait (%p1450_p2), %s1200_s25, 128  }
 0x4cd   : > { %1646 = vsyncadd (%p1450_p2), %s1200_s25, 4294967168  ;;  %s20_s17 = sadd.s32 1, %s1669_s17   ;;  %s1994_s12 = smov %s1653_s13 }
 0x4ce   : > { %p17_p3 = scmp.ge.s32.totalorder %s20_s17, 4   ;;  %s1995_s13 = smov %s1657_s14 }
 0x4cf   : > { %s1996_s14 = smov %s1800_s19  ;;  %s1997_s15 = smov %s1665_s16 }
 0x4d0   : > { %s1998_s16 = smov %s2000_s28  ;;  %19 = sbr.rel (!%p17_p3) target bundleno = 7 (0x7), region = 93 }
 0x4d5   :  { %1205 = vsyncpa [#allocation3], 1 }
 0x4d6   :  { %1207 = vsyncpa [#allocation3 + $0x1], 1 }
 0x4d7   :  { %1208 = vsyncpa [#allocation6], 1 }
 0x4d8   :  { %1209 = vsyncpa [#allocation4], 1 }
 0x4d9   :  { %1211 = vsyncpa [#allocation4 + $0x1], 1 }

</bundles_post_ra>
